<compile_context>
chip_gen: v5e
topology: v5e:2x2
jax: 0.10.0
libtpu: 0.0.40
codegen_flags: <defaults>
</compile_context>

<pallas_src>
import jax
import jax.numpy as jnp
from jax.experimental import pallas as pl
from jax.experimental.pallas import tpu as pltpu


_MAX_INFLIGHT_DMAS = 8        # at most this many concurrent chunk copies
_MIN_CHUNK_BYTES = 1 << 20    # keep each DMA burst >= ~1 MiB


def _plan_chunks(shape, itemsize):
    """Split dim 0 into a few large chunks: (num_chunks, chunk_rows, last_rows)."""
    size = 1
    for d in shape:
        size *= int(d)
    total_bytes = size * itemsize
    if len(shape) == 0 or shape[0] <= 1:
        return 1, 0, 0
    dim0 = int(shape[0])
    target = min(
        _MAX_INFLIGHT_DMAS,
        dim0,
        max(1, total_bytes // _MIN_CHUNK_BYTES),
    )
    chunk_rows = pl.cdiv(dim0, target)
    num_chunks = pl.cdiv(dim0, chunk_rows)
    last_rows = dim0 - (num_chunks - 1) * chunk_rows
    return num_chunks, chunk_rows, last_rows


def _make_identity_dma_kernel(num_chunks, chunk_rows, last_rows):
    """Kernel: copy x -> o entirely in HBM with `num_chunks` async DMAs."""

    def kernel(x_hbm, o_hbm, sems):
        copies = []
        for c in range(num_chunks):
            if num_chunks == 1:
                src, dst = x_hbm, o_hbm
            else:
                n = chunk_rows if c + 1 < num_chunks else last_rows
                sl = pl.ds(c * chunk_rows, n)
                src, dst = x_hbm.at[sl], o_hbm.at[sl]
            copies.append(pltpu.make_async_copy(src, dst, sems.at[c]))
        for cp in copies:      # launch every chunk first ...
            cp.start()
        for cp in copies:      # ... then drain them all
            cp.wait()

    return kernel


def identity_forward(x):
    """Identity.forward(x) -> x, via direct chunked HBM->HBM DMA."""
    if x.size == 0:
        return x

    itemsize = jnp.dtype(x.dtype).itemsize
    num_chunks, chunk_rows, last_rows = _plan_chunks(x.shape, itemsize)
    # TODO(synk): if dim 0 == 1 for a very large array, all bytes go through a
    # single DMA; chunking along an inner dim would allow more engines in flight.
    kernel = _make_identity_dma_kernel(num_chunks, chunk_rows, last_rows)

    return pl.pallas_call(
        kernel,
        out_shape=jax.ShapeDtypeStruct(x.shape, x.dtype),
        in_specs=[pl.BlockSpec(memory_space=pl.ANY)],
        out_specs=pl.BlockSpec(memory_space=pl.ANY),
        scratch_shapes=[pltpu.SemaphoreType.DMA((num_chunks,))],
        cost_estimate=pl.CostEstimate(
            flops=0,
            transcendentals=0,
            bytes_accessed=2 * int(x.size) * itemsize,
        ),
    )(x)


if __name__ == "__main__":
    key = jax.random.PRNGKey(0)
    # Small NCHW input consistent with a ResNet-style feature map.
    x = jax.random.normal(key, (2, 4, 16, 16), dtype=jnp.float32)

    y = identity_forward(x)
    jax.block_until_ready(y)

    assert y.shape == x.shape and y.dtype == x.dtype
    assert bool(jnp.all(y == x))
    print("KERNEL_OK")
</pallas_src>

<mosaic_0001>
module attributes {stable_mosaic.version = 11 : i64} {
  func.func @kernel(%arg0: memref<2x4x16x16xf32, #tpu.memory_space<any>>, %arg1: memref<2x4x16x16xf32, #tpu.memory_space<any>>, %arg2: memref<1x!tpu.dma_semaphore, #tpu.memory_space<semaphore_mem>>) attributes {dimension_semantics = [], scalar_prefetch = 0 : i64, scratch_operands = 1 : i64, tpu.core_type = #tpu.core_type<tc>} {
    %c0_i32 = arith.constant 0 : i32
    %0 = tpu.memref_slice %arg2[%c0_i32] : memref<1x!tpu.dma_semaphore, #tpu.memory_space<semaphore_mem>> -> memref<1x!tpu.dma_semaphore, #tpu.memory_space<semaphore_mem>>
    %1 = tpu.memref_squeeze %0 : memref<1x!tpu.dma_semaphore, #tpu.memory_space<semaphore_mem>> -> memref<!tpu.dma_semaphore, #tpu.memory_space<semaphore_mem>>
    tpu.enqueue_dma source(%arg0 : memref<2x4x16x16xf32, #tpu.memory_space<any>>) target(%arg1 : memref<2x4x16x16xf32, #tpu.memory_space<any>>) target_semaphore(%1 : memref<!tpu.dma_semaphore, #tpu.memory_space<semaphore_mem>>)
    %c0_i32_0 = arith.constant 0 : i32
    %2 = tpu.memref_slice %arg2[%c0_i32_0] : memref<1x!tpu.dma_semaphore, #tpu.memory_space<semaphore_mem>> -> memref<1x!tpu.dma_semaphore, #tpu.memory_space<semaphore_mem>>
    %3 = tpu.memref_squeeze %2 : memref<1x!tpu.dma_semaphore, #tpu.memory_space<semaphore_mem>> -> memref<!tpu.dma_semaphore, #tpu.memory_space<semaphore_mem>>
    tpu.wait_dma2 semaphore(%3 : memref<!tpu.dma_semaphore, #tpu.memory_space<semaphore_mem>>) src(%arg0 : memref<2x4x16x16xf32, #tpu.memory_space<any>>) dst(%arg1 : memref<2x4x16x16xf32, #tpu.memory_space<any>>)
    return
  }
}

</mosaic_0001>

<bundles_post_ra>
// kernel: tpu_custom_call.1
= control target key start
LH: loop header
LB: loop body
LE: loop exit
PB: predicated region body
PF: predicated region fallthrough
CT: control target
= control target key end

     0   :  { %s34_s12 = smov [#allocation2]   ;;  %s35_s13 = smov [#allocation3]   ;;  %s53_s0 = inlined_call_operand.hbm [shape: f32[2,4,16,16], index: 0, kind: input, shape index: {}]   ;;  %s54_s1 = inlined_call_operand.hbm [shape: f32[2,4,16,16], index: 1, kind: output, shape index: {}]  }
   0x1   :  { %s10_s8 = sshll.u32 %s53_s0, 4  ;;  %s12_s11 = sshll.u32 %s54_s1, 4  ;;  %s11_s8 = int_to_ptr.hbm [resolvable:$true] %s10_s8  ;;  %s13_s11 = int_to_ptr.hbm [resolvable:$true] %s12_s11 }
   0x2   :  { %s36_s14 = smov 0  }
   0x3   :  { %16 = dma.general %s11_s8, 2048, %s13_s11, %s34_s12, %s35_s13, [#allocation4], %s36_s14, 0  }
   0x4   :  { %32 = dma.done.wait [#allocation2], 2048 }
   0x5   :  { %33 = vsyncadd [#allocation2], 4294965248 }
   0x6   :  { %22 = vsyncmov [#allocation2] }
   0x9   :  { %s23_s15 = vpop.sfrf %22 }
   0xa   :  { %p28_p0 = scmp.ne.s32.totalorder %s23_s15, 0 }
   0xc   :  { %27 = shalt.err (%p28_p0)  }

</bundles_post_ra>
